<compile_context>
chip_gen: v6e
topology: v6e:2x2x1
jax: 0.10.0
libtpu: 0.0.40
codegen_flags: <defaults>
</compile_context>

<pallas_src>
import functools

import jax
import jax.numpy as jnp
import numpy as np
from jax.experimental import pallas as pl
from jax.experimental.pallas import tpu as pltpu

_LANES = 512          # lane width of the flattened layout (multiple of 128)
_MAX_TILE_ROWS = 512  # 512 x 512 f32 = 1 MiB per input block


def _focal_sums_kernel(pred_ref, gt_ref, out_ref):
    p = pred_ref[...]                          # (TR, L) f32
    g = gt_ref[...]
    pos = (g == 1.0).astype(jnp.float32)
    neg = (g < 1.0).astype(jnp.float32)
    omp = 1.0 - p
    omg = 1.0 - g
    omg2 = omg * omg
    neg_w = omg2 * omg2                        # (1 - gt)^4
    pos_loss = jnp.log(p) * (omp * omp) * pos
    neg_loss = jnp.log(omp) * (p * p) * neg_w * neg
    rows = [
        jnp.sum(pos_loss, axis=0, keepdims=True),   # sum pos_loss
        jnp.sum(neg_loss, axis=0, keepdims=True),   # sum neg_loss
        jnp.sum(pos, axis=0, keepdims=True),        # num_pos
        jnp.sum(neg, axis=0, keepdims=True),        # num_neg
    ]
    out_ref[...] = jnp.concatenate(rows, axis=0)[None]


def _focal_sums_mask_kernel(pred_ref, gt_ref, mask_ref, out_ref):
    p = pred_ref[...]
    g = gt_ref[...]
    m = mask_ref[...]
    pos = (g == 1.0).astype(jnp.float32)
    neg = (g < 1.0).astype(jnp.float32)
    omp = 1.0 - p
    omg = 1.0 - g
    omg2 = omg * omg
    neg_w = omg2 * omg2
    pos_loss = jnp.log(p) * (omp * omp) * pos
    neg_loss = jnp.log(omp) * (p * p) * neg_w * neg
    rows = [
        jnp.sum(pos_loss, axis=0, keepdims=True),        # unmasked (for means)
        jnp.sum(neg_loss, axis=0, keepdims=True),
        jnp.sum(pos_loss * m, axis=0, keepdims=True),    # masked sums
        jnp.sum(neg_loss * m, axis=0, keepdims=True),
        jnp.sum(pos * m, axis=0, keepdims=True),         # num_pos
        jnp.sum(neg * m, axis=0, keepdims=True),         # num_neg
    ]
    out_ref[...] = jnp.concatenate(rows, axis=0)[None]


def _tiling(n_elems):
    rows = -(-n_elems // _LANES)
    tile_rows = min(_MAX_TILE_ROWS, -(-rows // 8) * 8)   # multiple of 8
    rows_total = -(-rows // tile_rows) * tile_rows       # multiple of tile_rows
    return tile_rows, rows_total


def _pad_to_2d(x, pad_value, rows_total):
    flat = x.reshape(-1)
    n = flat.shape[0]
    total = rows_total * _LANES
    if total > n:
        pad = jnp.full((total - n,), pad_value, dtype=flat.dtype)
        flat = jnp.concatenate([flat, pad])
    return flat.reshape(rows_total, _LANES)


def _partial_sums(pred2d, gt2d, mask2d, tile_rows):
    rows_total = pred2d.shape[0]
    num_tiles = rows_total // tile_rows
    if mask2d is None:
        kernel, q, ops = _focal_sums_kernel, 4, (pred2d, gt2d)
    else:
        kernel, q, ops = _focal_sums_mask_kernel, 6, (pred2d, gt2d, mask2d)
    in_specs = [pl.BlockSpec((tile_rows, _LANES), lambda i: (i, 0))
                for _ in ops]
    partial = pl.pallas_call(
        kernel,
        out_shape=jax.ShapeDtypeStruct((num_tiles, q, _LANES), jnp.float32),
        grid_spec=pltpu.PrefetchScalarGridSpec(
            num_scalar_prefetch=0,
            grid=(num_tiles,),
            in_specs=in_specs,
            out_specs=pl.BlockSpec((1, q, _LANES), lambda i: (i, 0, 0)),
        ),
        compiler_params=pltpu.CompilerParams(
            dimension_semantics=("parallel",)),
    )(*ops)
    return jnp.sum(partial, axis=(0, 2))      # (q,) final scalars


@jax.jit
def focal_loss_seg(pred, gt, mask=None):
    """pred/gt: (B, C, H, W) float; mask: (B, H, W) float or None."""
    pred = pred.astype(jnp.float32)
    gt = gt.astype(jnp.float32)
    n_elems = int(np.prod(pred.shape))
    tile_rows, rows_total = _tiling(n_elems)
    pred2d = _pad_to_2d(pred, 0.5, rows_total)   # padding contributes 0
    gt2d = _pad_to_2d(gt, 2.0, rows_total)       # (gt==1)=0 and (gt<1)=0

    if mask is None:
        pos_sum, neg_sum, num_pos, num_neg = _partial_sums(
            pred2d, gt2d, None, tile_rows)
        pos_sum_m, neg_sum_m = pos_sum, neg_sum
    else:
        # mask (B, H, W) broadcast over the channel axis (docstring intent).
        # TODO(synk): stream the compact (B,H,W) mask instead of materialising
        # its channel broadcast (costs one extra full-size HBM stream).
        mask_full = jnp.broadcast_to(
            mask.astype(jnp.float32)[:, None, :, :], pred.shape)
        mask2d = _pad_to_2d(mask_full, 0.0, rows_total)
        (pos_sum, neg_sum, pos_sum_m, neg_sum_m,
         num_pos, num_neg) = _partial_sums(pred2d, gt2d, mask2d, tile_rows)

    inv_n = 1.0 / float(n_elems)
    pos_mean = pos_sum * inv_n                    # means over UNmasked loss
    neg_mean = neg_sum * inv_n
    safe_np = jnp.where(num_pos > 0, num_pos, 1.0)
    safe_nn = jnp.where(num_neg > 0, num_neg, 1.0)
    pos_term = pos_sum_m / safe_np
    neg_term = neg_sum_m / safe_nn
    # Exact branch structure of neg_loss_cornernet_segment:
    loss_pos0 = jnp.where(num_neg != 0, -neg_term, -neg_mean)
    loss_neg0 = jnp.where(num_pos != 0, -pos_term, -pos_mean)
    loss_both = -pos_term - neg_term
    return jnp.where(num_pos == 0, loss_pos0,
                     jnp.where(num_neg == 0, loss_neg0, loss_both))


def reference_focal_loss_seg(pred, gt, mask=None):
    """Straight JAX port of neg_loss_cornernet_segment (mask broadcast over C)."""
    pred = pred.astype(jnp.float32)
    gt = gt.astype(jnp.float32)
    pos_inds = (gt == 1.0).astype(jnp.float32)
    neg_inds = (gt < 1.0).astype(jnp.float32)
    omg = 1.0 - gt
    neg_weights = (omg * omg) * (omg * omg)
    omp = 1.0 - pred
    pos_loss = jnp.log(pred) * (omp * omp) * pos_inds
    neg_loss = jnp.log(omp) * (pred * pred) * neg_weights * neg_inds
    neg_loss_mean = float(neg_loss.mean())
    pos_loss_mean = float(pos_loss.mean())
    if mask is not None:
        m = mask.astype(jnp.float32)[:, None, :, :]
        pos_loss = pos_loss * m
        neg_loss = neg_loss * m
        num_pos = float((pos_inds * m).sum())
        num_neg = float((neg_inds * m).sum())
    else:
        num_pos = float(pos_inds.sum())
        num_neg = float(neg_inds.sum())
    pos_loss_s = float(pos_loss.sum())
    neg_loss_s = float(neg_loss.sum())
    loss = 0.0
    if num_pos == 0:
        loss = loss - (neg_loss_s / num_neg if num_neg != 0 else neg_loss_mean)
    elif num_neg == 0:
        loss = loss - (pos_loss_s / num_pos if num_pos != 0 else pos_loss_mean)
    else:
        loss = loss - pos_loss_s / num_pos - neg_loss_s / num_neg
    return loss


if __name__ == "__main__":
    B, C, H, W = 2, 4, 16, 16
    key = jax.random.PRNGKey(0)
    k1, k2, k3 = jax.random.split(key, 3)

    # pred: probabilities strictly inside (0, 1); gt: heatmap in [0, 1) with a
    # few exact positives (gt == 1) like a CenterNet target.
    pred = jax.random.uniform(k1, (B, C, H, W), jnp.float32,
                              minval=1e-4, maxval=1.0 - 1e-4)
    gt = jax.random.uniform(k2, (B, C, H, W), jnp.float32,
                            minval=0.0, maxval=1.0 - 1e-6)
    gt = gt.at[0, 0, 3, 5].set(1.0).at[0, 2, 7, 9].set(1.0)
    gt = gt.at[1, 1, 10, 2].set(1.0).at[1, 3, 15, 15].set(1.0)
    mask = (jax.random.uniform(k3, (B, H, W)) > 0.3).astype(jnp.float32)

    # No-mask path.
    out = jax.block_until_ready(focal_loss_seg(pred, gt))
    ref = reference_focal_loss_seg(pred, gt)
    np.testing.assert_allclose(float(out), ref, rtol=1e-5, atol=1e-6)

    # Masked path.
    out_m = jax.block_until_ready(focal_loss_seg(pred, gt, mask))
    ref_m = reference_focal_loss_seg(pred, gt, mask)
    np.testing.assert_allclose(float(out_m), ref_m, rtol=1e-5, atol=1e-6)

    print("KERNEL_OK")
</pallas_src>

<mosaic_0001>
module attributes {stable_mosaic.version = 11 : i64} {
  func.func @_focal_sums_kernel(%arg0: i32, %arg1: memref<8x512xf32, #tpu.memory_space<vmem>>, %arg2: memref<8x512xf32, #tpu.memory_space<vmem>>, %arg3: memref<1x4x512xf32, #tpu.memory_space<vmem>>) attributes {dimension_semantics = [#tpu.dimension_semantics<parallel>], iteration_bounds = array<i64: 1>, scalar_prefetch = 0 : i64, scratch_operands = 0 : i64, tpu.core_type = #tpu.core_type<tc>, window_params = [{transform_indices = @transform_0, window_bounds = array<i64: 8, 512>}, {transform_indices = @transform_1, window_bounds = array<i64: 8, 512>}, {transform_indices = @transform_2, window_bounds = array<i64: 1, 4, 512>}]} {
    %c0 = arith.constant 0 : index
    %c0_0 = arith.constant 0 : index
    %0 = vector.load %arg1[%c0, %c0_0] : memref<8x512xf32, #tpu.memory_space<vmem>>, vector<8x512xf32>
    %c0_1 = arith.constant 0 : index
    %c0_2 = arith.constant 0 : index
    %1 = vector.load %arg2[%c0_1, %c0_2] : memref<8x512xf32, #tpu.memory_space<vmem>>, vector<8x512xf32>
    %cst = arith.constant 1.000000e+00 : f32
    %2 = vector.broadcast %cst : f32 to vector<8x512xf32>
    %3 = arith.cmpf oeq, %1, %2 : vector<8x512xf32>
    %4 = arith.extui %3 : vector<8x512xi1> to vector<8x512xi32>
    %5 = arith.sitofp %4 : vector<8x512xi32> to vector<8x512xf32>
    %cst_3 = arith.constant 1.000000e+00 : f32
    %6 = vector.broadcast %cst_3 : f32 to vector<8x512xf32>
    %7 = arith.cmpf olt, %1, %6 : vector<8x512xf32>
    %8 = arith.extui %7 : vector<8x512xi1> to vector<8x512xi32>
    %9 = arith.sitofp %8 : vector<8x512xi32> to vector<8x512xf32>
    %cst_4 = arith.constant 1.000000e+00 : f32
    %10 = vector.broadcast %cst_4 : f32 to vector<8x512xf32>
    %11 = arith.subf %10, %0 : vector<8x512xf32>
    %cst_5 = arith.constant 1.000000e+00 : f32
    %12 = vector.broadcast %cst_5 : f32 to vector<8x512xf32>
    %13 = arith.subf %12, %1 : vector<8x512xf32>
    %14 = arith.mulf %13, %13 : vector<8x512xf32>
    %15 = arith.mulf %14, %14 : vector<8x512xf32>
    %16 = math.log %0 : vector<8x512xf32>
    %17 = arith.mulf %11, %11 : vector<8x512xf32>
    %18 = arith.mulf %16, %17 : vector<8x512xf32>
    %19 = arith.mulf %18, %5 : vector<8x512xf32>
    %20 = math.log %11 : vector<8x512xf32>
    %21 = arith.mulf %0, %0 : vector<8x512xf32>
    %22 = arith.mulf %20, %21 : vector<8x512xf32>
    %23 = arith.mulf %22, %15 : vector<8x512xf32>
    %24 = arith.mulf %23, %9 : vector<8x512xf32>
    %cst_6 = arith.constant dense<0.000000e+00> : vector<512xf32>
    %25 = vector.multi_reduction <add>, %19, %cst_6 [0] : vector<8x512xf32> to vector<512xf32>
    %26 = vector.shape_cast %25 : vector<512xf32> to vector<1x512xf32>
    %cst_7 = arith.constant dense<0.000000e+00> : vector<512xf32>
    %27 = vector.multi_reduction <add>, %24, %cst_7 [0] : vector<8x512xf32> to vector<512xf32>
    %28 = vector.shape_cast %27 : vector<512xf32> to vector<1x512xf32>
    %cst_8 = arith.constant dense<0.000000e+00> : vector<512xf32>
    %29 = vector.multi_reduction <add>, %5, %cst_8 [0] : vector<8x512xf32> to vector<512xf32>
    %30 = vector.shape_cast %29 : vector<512xf32> to vector<1x512xf32>
    %cst_9 = arith.constant dense<0.000000e+00> : vector<512xf32>
    %31 = vector.multi_reduction <add>, %9, %cst_9 [0] : vector<8x512xf32> to vector<512xf32>
    %32 = vector.shape_cast %31 : vector<512xf32> to vector<1x512xf32>
    %33 = tpu.concatenate %26, %28, %30, %32 in 0 : vector<1x512xf32>, vector<1x512xf32>, vector<1x512xf32>, vector<1x512xf32> -> vector<4x512xf32>
    %34 = vector.shape_cast %33 : vector<4x512xf32> to vector<1x4x512xf32>
    %c0_10 = arith.constant 0 : index
    %c0_11 = arith.constant 0 : index
    %c0_12 = arith.constant 0 : index
    %35 = vector.load %arg3[%c0_10, %c0_11, %c0_12] : memref<1x4x512xf32, #tpu.memory_space<vmem>>, vector<1x4x512xf32>
    tpu.vector_store %arg3[%c0_10, %c0_11, %c0_12], %34 {strides = array<i32>} : memref<1x4x512xf32, #tpu.memory_space<vmem>>, vector<1x4x512xf32>,
    return
  }
  func.func @transform_0(%arg0: i32) -> (i32, i32) {
    %c0_i32 = arith.constant 0 : i32
    %c0_i32_0 = arith.constant 0 : i32
    return %arg0, %c0_i32 : i32, i32
  }
  func.func @transform_1(%arg0: i32) -> (i32, i32) {
    %c0_i32 = arith.constant 0 : i32
    %c0_i32_0 = arith.constant 0 : i32
    return %arg0, %c0_i32 : i32, i32
  }
  func.func @transform_2(%arg0: i32) -> (i32, i32, i32) {
    %c0_i32 = arith.constant 0 : i32
    %c0_i32_0 = arith.constant 0 : i32
    %c0_i32_1 = arith.constant 0 : i32
    return %arg0, %c0_i32, %c0_i32_0 : i32, i32, i32
  }
}

</mosaic_0001>

<bundles_post_ra>
// kernel: focal_loss_seg.1
= control target key start
LH: loop header
LB: loop body
LE: loop exit
PB: predicated region body
PF: predicated region fallthrough
CT: control target
= control target key end

     0   :  { %v253_v10 = vmov 0.0   ;;  %vm199_vm8 = vcmask 1040384   ;;  %vm204_vm9 = vcmask 1041408   ;;  %vm209_vm10 = vcmask 1042432   ;;  %s398_s0 = inlined_call_operand.vmem [shape: f32[8,512], index: 0, kind: input, shape index: {}]   ;;  %s399_s1 = inlined_call_operand.vmem [shape: f32[8,512], index: 1, kind: input, shape index: {}]   ;;  %s400_s2 = inlined_call_operand.vmem [shape: f32[1,4,512], index: 2, kind: output, shape index: {}]  }
   0x1   :  { %v272_v0 = vld [vmem:[%s398_s0] sm:$0xff]  ;;  %v277_v1 = vld [vmem:[%s398_s0 + $0x8] sm:$0xff]  ;;  %v282_v2 = vld [vmem:[%s398_s0 + $0x10] sm:$0xff] }
   0x2   :  { %v15_v3 = vld [vmem:[%s399_s1] sm:$0xff]  ;;  %v16_v4 = vld [vmem:[%s399_s1 + $0x8] sm:$0xff]  ;;  %237 = vlog2.f32 %v272_v0  ;;  %v17_v5 = vld [vmem:[%s399_s1 + $0x10] sm:$0xff]  ;;  %v43_v7 = vsub.f32 1.0, %v272_v0  ;;  %v44_v8 = vsub.f32 1.0, %v277_v1  ;;  %v45_v9 = vsub.f32 1.0, %v282_v2 }
   0x3   :  { %vm19_vm0 = vcmp.eq.f32.partialorder %v15_v3, 1.0  ;;  %vm20_vm1 = vcmp.eq.f32.partialorder %v16_v4, 1.0  ;;  %vm21_vm2 = vcmp.eq.f32.partialorder %v17_v5, 1.0  ;;  %v18_v6 = vld [vmem:[%s399_s1 + $0x18] sm:$0xff]  ;;  %vm31_vm3 = vcmp.lt.f32.partialorder %v15_v3, 1.0 }
   0x4   :  { %vm22_vm4 = vcmp.eq.f32.partialorder %v18_v6, 1.0  ;;  %v228_v11 = vsel %vm19_vm0, 1.0, %v253_v10  ;;  %v300_v12 = vsel %vm20_vm1, 1.0, %v253_v10  ;;  %vm32_vm5 = vcmp.lt.f32.partialorder %v16_v4, 1.0  ;;  %v305_v13 = vld [vmem:[%s398_s0 + $0x18] sm:$0xff] }
   0x5   :  { %v307_v14 = vsel %vm21_vm2, 1.0, %v253_v10  ;;  %vm33_vm6 = vcmp.lt.f32.partialorder %v17_v5, 1.0  ;;  %vm34_vm7 = vcmp.lt.f32.partialorder %v18_v6, 1.0  ;;  %v47_v15 = vsub.f32 1.0, %v15_v3 }
   0x6   :  { %v48_v16 = vsub.f32 1.0, %v16_v4  ;;  %v49_v17 = vsub.f32 1.0, %v17_v5  ;;  %v50_v18 = vsub.f32 1.0, %v18_v6  ;;  %239 = vlog2.f32 %v277_v1 }
   0x7   :  { %v310_v19 = vsel %vm22_vm4, 1.0, %v253_v10  ;;  %v313_v20 = vsel %vm31_vm3, 1.0, %v253_v10  ;;  %v315_v21 = vsel %vm32_vm5, 1.0, %v253_v10  ;;  %241 = vlog2.f32 %v282_v2 }
   0x8   :  { %v318_v22 = vsel %vm33_vm6, 1.0, %v253_v10  ;;  %v320_v23 = vsel %vm34_vm7, 1.0, %v253_v10  ;;  %v46_v24 = vsub.f32 1.0, %v305_v13  ;;  %243 = vlog2.f32 %v305_v13 }
   0x9   :  { %v51_v25 = vmul.f32 %v47_v15, %v47_v15  ;;  %v67_v26 = vmul.f32 %v43_v7, %v43_v7  ;;  %v68_v27 = vmul.f32 %v44_v8, %v44_v8  ;;  %245 = vlog2.f32 %v43_v7 }
   0xa   :  { %v52_v28 = vmul.f32 %v48_v16, %v48_v16  ;;  %v53_v29 = vmul.f32 %v49_v17, %v49_v17  ;;  %v54_v30 = vmul.f32 %v50_v18, %v50_v18  ;;  %247 = vlog2.f32 %v44_v8 }
   0xb   :  { %v69_v31 = vmul.f32 %v45_v9, %v45_v9  ;;  %v70_v32 = vmul.f32 %v46_v24, %v46_v24  ;;  %249 = vlog2.f32 %v45_v9  ;;  %v151_v33 = vrot.slane %v228_v11, 4 }
   0xc   :  { %251 = vlog2.f32 %v46_v24  ;;  %v157_v34 = vrot.slane %v300_v12, 4  ;;  %v163_v35 = vrot.slane %v307_v14, 4  ;;  %v169_v36 = vrot.slane %v310_v19, 4 }
   0xd   :  { %v152_v38 = vadd.f32 %v228_v11, %v151_v33  ;;  %v175_v39 = vrot.slane %v313_v20, 4  ;;  %v181_v40 = vrot.slane %v315_v21, 4  ;;  %v187_v41 = vrot.slane %v318_v22, 4 }
   0xe   :  { %v158_v43 = vadd.f32 %v300_v12, %v157_v34  ;;  %v164_v44 = vadd.f32 %v307_v14, %v163_v35  ;;  %v170_v45 = vadd.f32 %v310_v19, %v169_v36  ;;  %v55_v50 = vmul.f32 %v51_v25, %v51_v25 }
   0xf   :  { %v238_v37 = vpop.eup %237  ;;  %v153_v46 = vrot.slane %v152_v38, 2  ;;  %v176_v47 = vadd.f32 %v313_v20, %v175_v39  ;;  %v182_v48 = vadd.f32 %v315_v21, %v181_v40  ;;  %v188_v49 = vadd.f32 %v318_v22, %v187_v41 }
  0x10   :  { %v60_v42 = vmul.f32 0.6931472, %v238_v37  ;;  %v56_v51 = vmul.f32 %v52_v28, %v52_v28  ;;  %v159_v53 = vrot.slane %v158_v43, 2  ;;  %v57_v54 = vmul.f32 %v53_v29, %v53_v29 }
  0x11   :  { %v154_v55 = vadd.f32 %v153_v46, %v152_v38  ;;  %v165_v56 = vrot.slane %v164_v44, 2  ;;  %v171_v57 = vrot.slane %v170_v45, 2  ;;  %v58_v58 = vmul.f32 %v54_v30, %v54_v30 }
  0x12   :  { %v71_v52 = vmul.f32 %v67_v26, %v60_v42  ;;  %v87_v60 = vmul.f32 %v272_v0, %v272_v0  ;;  %v177_v61 = vrot.slane %v176_v47, 2  ;;  %v88_v63 = vmul.f32 %v277_v1, %v277_v1 }
  0x13   :  { %v240_v62 = vpop.eup %239  ;;  %v89_v3 = vmul.f32 %v282_v2, %v282_v2  ;;  %v183_v4 = vrot.slane %v182_v48, 2  ;;  %v189_v5 = vrot.slane %v188_v49, 2  ;;  %v90_v8 = vmul.f32 %v305_v13, %v305_v13 }
  0x14   :  { %v75_v59 = vmul.f32 %v228_v11, %v71_v52  ;;  %v242_v6 = vpop.eup %241  ;;  %v62_v7 = vmul.f32 0.6931472, %v240_v62  ;;  %v344_v10 = vadd.f32 %v159_v53, %v158_v43  ;;  %v155_v15 = vrot.slane %v154_v55, 1 }
  0x15   :  { %v244_v11 = vpop.eup %243  ;;  %v64_v0 = vmul.f32 0.6931472, %v242_v6  ;;  %v346_v16 = vadd.f32 %v165_v56, %v164_v44  ;;  %v348_v17 = vadd.f32 %v171_v57, %v170_v45  ;;  %v350_v25 = vadd.f32 %v177_v61, %v176_v47 }
  0x16   :  { %v103_v9 = vrot.slane %v75_v59, 4  ;;  %v246_v1 = vpop.eup %245  ;;  %v66_v18 = vmul.f32 0.6931472, %v244_v11  ;;  %v72_v2 = vmul.f32 %v68_v27, %v62_v7  ;;  %v352_v13 = vadd.f32 %v183_v4, %v182_v48 }
  0x17   :  { %v248_v26 = vpop.eup %247  ;;  %v73_v28 = vmul.f32 %v69_v31, %v64_v0  ;;  %v80_v29 = vmul.f32 0.6931472, %v246_v1  ;;  %v354_v30 = vadd.f32 %v189_v5, %v188_v49  ;;  %v161_v37 = vrot.slane %v344_v10, 1 }
  0x18   :  { %v104_v24 = vadd.f32 %v103_v9, %v75_v59  ;;  %v250_v33 = vpop.eup %249  ;;  %v74_v34 = vmul.f32 %v70_v32, %v66_v18  ;;  %v76_v35 = vmul.f32 %v300_v12, %v72_v2  ;;  %v82_v36 = vmul.f32 0.6931472, %v248_v26 }
  0x19   :  { %v252_v38 = vpop.eup %251  ;;  %v77_v27 = vmul.f32 %v307_v14, %v73_v28  ;;  %v84_v39 = vmul.f32 0.6931472, %v250_v33  ;;  %v91_v40 = vmul.f32 %v87_v60, %v80_v29  ;;  %v167_v41 = vrot.slane %v346_v16, 1 }
  0x1a   :  { %v78_v31 = vmul.f32 %v310_v19, %v74_v34  ;;  %v86_v42 = vmul.f32 0.6931472, %v252_v38  ;;  %v92_v43 = vmul.f32 %v88_v63, %v82_v36  ;;  %v105_v44 = vrot.slane %v104_v24, 2 }
  0x1b   :  { %v93_v45 = vmul.f32 %v89_v3, %v84_v39  ;;  %v95_v46 = vmul.f32 %v91_v40, %v55_v50  ;;  %v109_v32 = vrot.slane %v76_v35, 4  ;;  %v115_v47 = vrot.slane %v77_v27, 4 }
  0x1c   :  { %v94_v12 = vmul.f32 %v90_v8, %v86_v42  ;;  %v96_v48 = vmul.f32 %v92_v43, %v56_v51  ;;  %v121_v49 = vrot.slane %v78_v31, 4  ;;  %v361_v52 = vadd.f32 %v155_v15, %v154_v55 }
  0x1d   :  { %v97_v53 = vmul.f32 %v93_v45, %v57_v54  ;;  %v99_v14 = vmul.f32 %v313_v20, %v95_v46  ;;  %v110_v56 = vadd.f32 %v109_v32, %v76_v35  ;;  %v116_v57 = vadd.f32 %v115_v47, %v77_v27 }
  0x1e   :  { %v98_v59 = vmul.f32 %v94_v12, %v58_v58  ;;  %v100_v19 = vmul.f32 %v315_v21, %v96_v48  ;;  %v106_v60 = vadd.f32 %v105_v44, %v104_v24  ;;  %v122_v61 = vadd.f32 %v121_v49, %v78_v31 }
  0x1f   :  { %v101_v62 = vmul.f32 %v318_v22, %v97_v53  ;;  %v111_v50 = vrot.slane %v110_v56, 2  ;;  %v117_v63 = vrot.slane %v116_v57, 2  ;;  %v127_v3 = vrot.slane %v99_v14, 4 }
  0x20   :  { %v102_v51 = vmul.f32 %v320_v23, %v98_v59  ;;  %v123_v4 = vrot.slane %v122_v61, 2  ;;  %v133_v55 = vrot.slane %v100_v19, 4  ;;  %v179_v54 = vrot.slane %v350_v25, 1 }
  0x21   :  { %v112_v20 = vadd.f32 %v111_v50, %v110_v56  ;;  %v118_v5 = vadd.f32 %v117_v63, %v116_v57  ;;  %v128_v6 = vadd.f32 %v127_v3, %v99_v14  ;;  %v139_v58 = vrot.slane %v101_v62, 4 }
  0x22   :  { %v124_v21 = vadd.f32 %v123_v4, %v122_v61  ;;  %v134_v7 = vadd.f32 %v133_v55, %v100_v19  ;;  %v145_v8 = vrot.slane %v102_v51, 4  ;;  %v173_v22 = vrot.slane %v348_v17, 1 }
  0x23   :  { %v107_v9 = vrot.slane %v106_v60, 1  ;;  %v129_v11 = vrot.slane %v128_v6, 2  ;;  %v140_v0 = vadd.f32 %v139_v58, %v101_v62  ;;  %v162_v15 = vadd.f32 %v161_v37, %v344_v10 }
  0x24   :  { %v113_v1 = vrot.slane %v112_v20, 1  ;;  %v135_v18 = vrot.slane %v134_v7, 2  ;;  %v146_v2 = vadd.f32 %v145_v8, %v102_v51  ;;  %v168_v24 = vadd.f32 %v167_v41, %v346_v16 }
  0x25   :  { %v119_v26 = vrot.slane %v118_v5, 1  ;;  %v130_v28 = vadd.f32 %v129_v11, %v128_v6  ;;  %v141_v29 = vrot.slane %v140_v0, 2  ;;  %v180_v33 = vadd.f32 %v179_v54, %v350_v25 }
  0x26   :  { %v125_v34 = vrot.slane %v124_v21, 1  ;;  %v136_v35 = vadd.f32 %v135_v18, %v134_v7  ;;  %v147_v36 = vrot.slane %v146_v2, 2  ;;  %v185_v38 = vrot.slane %v352_v13, 1 }
  0x27   :  { %v108_v27 = vadd.f32 %v107_v9, %v106_v60  ;;  %v131_v39 = vrot.slane %v130_v28, 1  ;;  %v142_v40 = vadd.f32 %v141_v29, %v140_v0  ;;  %v193_v10 = vrot.slane %v320_v23, 4 }
  0x28   :  { %v114_v37 = vadd.f32 %v113_v1, %v112_v20  ;;  %v137_v31 = vrot.slane %v136_v35, 1  ;;  %v148_v42 = vadd.f32 %v147_v36, %v146_v2  ;;  %v191_v16 = vrot.slane %v354_v30, 1 }
  0x29   :  { %v120_v41 = vadd.f32 %v119_v26, %v118_v5  ;;  %v132_v43 = vadd.f32 %v131_v39, %v130_v28  ;;  %v143_v44 = vrot.slane %v142_v40, 1  ;;  %v194_v25 = vadd.f32 %v320_v23, %v193_v10 }
  0x2a   :  { %v126_v45 = vadd.f32 %v125_v34, %v124_v21  ;;  %v138_v46 = vadd.f32 %v137_v31, %v136_v35  ;;  %v149_v32 = vrot.slane %v148_v42, 1  ;;  %v186_v47 = vadd.f32 %v185_v38, %v352_v13 }
  0x2b   :  { %v144_v12 = vadd.f32 %v143_v44, %v142_v40  ;;  %v174_v48 = vadd.f32 %v173_v22, %v348_v17  ;;  %v195_v49 = vrot.slane %v194_v25, 2  ;;  %v200_v53 = vsel %vm199_vm8, %v108_v27, %v132_v43 }
  0x2c   :  { %v150_v14 = vadd.f32 %v149_v32, %v148_v42  ;;  %v192_v56 = vadd.f32 %v191_v16, %v354_v30  ;;  %v201_v57 = vsel %vm199_vm8, %v114_v37, %v138_v46  ;;  %v205_v59 = vsel %vm204_vm9, %v200_v53, %v361_v52 }
  0x2d   :  { %v196_v23 = vadd.f32 %v195_v49, %v194_v25  ;;  %v202_v19 = vsel %vm199_vm8, %v120_v41, %v144_v12  ;;  %v206_v60 = vsel %vm204_vm9, %v201_v57, %v162_v15  ;;  %v210_v13 = vsel %vm209_vm10, %v205_v59, %v180_v33 }
  0x2e   :  { %v203_v17 = vsel %vm199_vm8, %v126_v45, %v150_v14  ;;  %v207_v61 = vsel %vm204_vm9, %v202_v19, %v168_v24  ;;  %v211_v62 = vsel %vm209_vm10, %v206_v60, %v186_v47 }
  0x2f   :  { %v197_v50 = vrot.slane %v196_v23, 1  ;;  %v218_v30 = vcombine.low %v210_v13, %v211_v62  ;;  %v208_v63 = vsel %vm204_vm9, %v203_v17, %v174_v48  ;;  %v212_v52 = vsel %vm209_vm10, %v207_v61, %v192_v56 }
  0x31   :  { %v198_v3 = vadd.f32 %v197_v50, %v196_v23  ;;  %222 = vst [vmem:[%s400_s2] sm:$0xff] %v218_v30 }
  0x33   :  { %v213_v51 = vsel %vm209_vm10, %v208_v63, %v198_v3 }
  0x34   :  { %v219_v4 = vcombine.low %v212_v52, %v213_v51 }
  0x36   :  { %223 = vst [vmem:[%s400_s2 + $0x8] sm:$0xff] %v219_v4 }

</bundles_post_ra>
